<compile_context>
chip_gen: v5e
topology: v5e:2x2
jax: 0.10.0
libtpu: 0.0.40
codegen_flags: <defaults>
</compile_context>

<pallas_src>
import functools

import jax
import jax.numpy as jnp
from jax.experimental import pallas as pl
from jax.experimental.pallas import tpu as pltpu

EPS = 1e-5
LANE = 128
VMEM_LIMIT = 32 * 1024 * 1024


# ----------------------------- small helpers --------------------------------

def _cdiv(a, b):
    return (a + b - 1) // b


def _round_up(x, m):
    return _cdiv(x, m) * m


def _pick_row_tile(m, pref=256):
    """Pixel-row tile: multiple of 8, prefers >= 2 grid steps."""
    if m >= 2 * pref:
        return pref
    return min(_round_up(max(_cdiv(m, 2), 8), 8), _round_up(m, 8))


def _divisor_tile(n, pref=512):
    """Largest divisor of n that is a multiple of 8 and <= pref (else n)."""
    cands = [d for d in range(8, min(pref, n) + 1, 8) if n % d == 0]
    return max(cands) if cands else n


def _divisor_at_most(n, pref):
    for d in range(min(pref, n), 0, -1):
        if n % d == 0:
            return d
    return 1


# ----------------------------- Pallas kernels -------------------------------

def _mm_bn_relu_kernel(x_ref, w_ref, scale_ref, bias_ref, o_ref):
    # 1x1 conv (as matmul) + folded BN + ReLU; bf16 tiles, f32 accumulate.
    y = jnp.dot(x_ref[...], w_ref[...], preferred_element_type=jnp.float32)
    y = y * scale_ref[...] + bias_ref[...]
    o_ref[...] = jnp.maximum(y, 0.0).astype(o_ref.dtype)


def _grouped_conv3x3_kernel(w_ref, scale_ref, bias_ref, hp_ref, o_ref,
                            xbuf, sem, *, st, th, qh_max, wo, cgp):
    # Grouped 3x3 stride-st conv + BN + ReLU, one group / row-tile per step.
    # The input is phase-major (N, st*st, Hq, Wq, G, Cg_p) so every tap is a
    # unit-stride window of the DMA'd halo block (fused im2col).
    n = pl.program_id(0)
    r = pl.program_id(1)
    g = pl.program_id(2)
    cp = pltpu.make_async_copy(
        hp_ref.at[n, :, pl.ds(r * th, th + qh_max), :, g, :], xbuf, sem)
    cp.start()
    cp.wait()
    acc = jnp.zeros((th * wo, cgp), jnp.float32)
    for kh in range(3):
        qh, ph = kh // st, kh % st
        for kw in range(3):
            qw, pw = kw // st, kw % st
            win = xbuf[ph * st + pw, pl.ds(qh, th), pl.ds(qw, wo), :]
            acc = acc + jnp.dot(win.reshape(th * wo, cgp),
                                w_ref[0, kh * 3 + kw],
                                preferred_element_type=jnp.float32)
    y = acc * scale_ref[0] + bias_ref[0]
    y = jnp.maximum(y, 0.0)
    o_ref[...] = y.reshape(1, th, wo, cgp).astype(o_ref.dtype)


def _gap_kernel(x_ref, o_ref, *, inv_hw):
    # Tiled global average pool: accumulate sums over pixel tiles, finalize.
    p = pl.program_id(1)

    @pl.when(p == 0)
    def _init():
        o_ref[...] = jnp.zeros_like(o_ref)

    o_ref[...] += jnp.sum(x_ref[...].astype(jnp.float32), axis=1, keepdims=True)

    @pl.when(p == pl.num_programs(1) - 1)
    def _fin():
        o_ref[...] = o_ref[...] * inv_hw


def _final_fused_kernel(h_ref, s_ref, w3_ref, sc3_ref, b3_ref,
                        xs_ref, wsk_ref, scs_ref, bss_ref, o_ref):
    # SE channel scale -> conv3(1x1)+BN, fused with skip 1x1 conv+BN,
    # residual add and final ReLU: a single pass over the activation.
    h = h_ref[0].astype(jnp.float32) * s_ref[0]
    y = jnp.dot(h.astype(jnp.bfloat16), w3_ref[...],
                preferred_element_type=jnp.float32)
    y = y * sc3_ref[...] + b3_ref[...]
    ys = jnp.dot(xs_ref[0], wsk_ref[...], preferred_element_type=jnp.float32)
    y = y + ys * scs_ref[...] + bss_ref[...]
    o_ref[0] = jnp.maximum(y, 0.0)


# ----------------------------- Pallas wrappers -------------------------------

def matmul_bn_relu(x, w, scale, bias, out_dtype=jnp.bfloat16):
    m, k = x.shape
    n = w.shape[1]
    tm = _pick_row_tile(m)
    mp = _round_up(m, tm)
    if mp != m:
        x = jnp.pad(x, ((0, mp - m), (0, 0)))
    out = pl.pallas_call(
        _mm_bn_relu_kernel,
        out_shape=jax.ShapeDtypeStruct((mp, n), out_dtype),
        grid=(mp // tm,),
        in_specs=[pl.BlockSpec((tm, k), lambda i: (i, 0)),
                  pl.BlockSpec((k, n), lambda i: (0, 0)),
                  pl.BlockSpec((1, n), lambda i: (0, 0)),
                  pl.BlockSpec((1, n), lambda i: (0, 0))],
        out_specs=pl.BlockSpec((tm, n), lambda i: (i, 0)),
        compiler_params=pltpu.CompilerParams(
            dimension_semantics=("parallel",),
            vmem_limit_bytes=VMEM_LIMIT),
    )(x, w, scale.reshape(1, -1), bias.reshape(1, -1))
    return out[:m] if mp != m else out


def grouped_conv3x3_bn_relu(hp, w2g, scale2, bias2, *, stride, n_batch,
                            ho, wo, wq, cgp):
    groups = w2g.shape[0]
    qh_max = 2 // stride
    th = _divisor_at_most(ho, 16)
    rt = ho // th
    kern = functools.partial(_grouped_conv3x3_kernel, st=stride, th=th,
                             qh_max=qh_max, wo=wo, cgp=cgp)
    return pl.pallas_call(
        kern,
        out_shape=jax.ShapeDtypeStruct((n_batch, ho, wo, groups * cgp),
                                       jnp.bfloat16),
        grid=(n_batch, rt, groups),
        in_specs=[pl.BlockSpec((1, 9, cgp, cgp), lambda n, r, g: (g, 0, 0, 0)),
                  pl.BlockSpec((1, 1, cgp), lambda n, r, g: (g, 0, 0)),
                  pl.BlockSpec((1, 1, cgp), lambda n, r, g: (g, 0, 0)),
                  pl.BlockSpec(memory_space=pl.ANY)],
        out_specs=pl.BlockSpec((1, th, wo, cgp), lambda n, r, g: (n, r, 0, g)),
        scratch_shapes=[
            pltpu.VMEM((stride * stride, th + qh_max, wq, cgp), jnp.bfloat16),
            pltpu.SemaphoreType.DMA(()),
        ],
        compiler_params=pltpu.CompilerParams(
            dimension_semantics=("parallel", "parallel", "parallel"),
            vmem_limit_bytes=VMEM_LIMIT),
    )(w2g, scale2, bias2, hp)


def global_avg_pool(x3d):
    n, hw, c = x3d.shape
    thw = _divisor_tile(hw, 1024)
    kern = functools.partial(_gap_kernel, inv_hw=1.0 / hw)
    return pl.pallas_call(
        kern,
        out_shape=jax.ShapeDtypeStruct((n, 1, c), jnp.float32),
        grid=(n, hw // thw),
        in_specs=[pl.BlockSpec((1, thw, c), lambda i, p: (i, p, 0))],
        out_specs=pl.BlockSpec((1, 1, c), lambda i, p: (i, 0, 0)),
        compiler_params=pltpu.CompilerParams(
            dimension_semantics=("parallel", "arbitrary"),
            vmem_limit_bytes=VMEM_LIMIT),
    )(x3d)


def conv3_skip_fused(h3d, sg, w3, sc3, b3, xs3d, wsk, scs, bs):
    n, hw, cb = h3d.shape
    cin_p = xs3d.shape[-1]
    cout = w3.shape[1]
    tp = _divisor_tile(hw, 512)
    return pl.pallas_call(
        _final_fused_kernel,
        out_shape=jax.ShapeDtypeStruct((n, hw, cout), jnp.float32),
        grid=(n, hw // tp),
        in_specs=[pl.BlockSpec((1, tp, cb), lambda i, p: (i, p, 0)),
                  pl.BlockSpec((1, 1, cb), lambda i, p: (i, 0, 0)),
                  pl.BlockSpec((cb, cout), lambda i, p: (0, 0)),
                  pl.BlockSpec((1, cout), lambda i, p: (0, 0)),
                  pl.BlockSpec((1, cout), lambda i, p: (0, 0)),
                  pl.BlockSpec((1, tp, cin_p), lambda i, p: (i, p, 0)),
                  pl.BlockSpec((cin_p, cout), lambda i, p: (0, 0)),
                  pl.BlockSpec((1, cout), lambda i, p: (0, 0)),
                  pl.BlockSpec((1, cout), lambda i, p: (0, 0))],
        out_specs=pl.BlockSpec((1, tp, cout), lambda i, p: (i, p, 0)),
        compiler_params=pltpu.CompilerParams(
            dimension_semantics=("parallel", "parallel"),
            vmem_limit_bytes=VMEM_LIMIT),
    )(h3d, sg, w3, sc3.reshape(1, -1), b3.reshape(1, -1),
      xs3d, wsk, scs.reshape(1, -1), bs.reshape(1, -1))


# ----------------------------- JAX glue --------------------------------------

def fold_bn(p):
    scale = p["gamma"] / jnp.sqrt(p["var"] + EPS)
    bias = p["beta"] - p["mean"] * scale
    return scale, bias


def _group_pad_vec(v, groups, cgp):
    cg = v.shape[0] // groups
    return jnp.pad(v.reshape(groups, cg), ((0, 0), (0, cgp - cg))).reshape(-1)


def res_basic_block_forward(x_nchw, P, stride):
    cfg = P["cfg"]
    groups = cfg["groups"]
    with_se = cfg["with_se"]

    x = jnp.transpose(x_nchw, (0, 2, 3, 1)).astype(jnp.float32)   # NHWC
    n_b, h_in, w_sp, c_in = x.shape
    w_b = P["w1"].shape[0]
    w_out = P["w3"].shape[0]
    cg = w_b // groups

    cin_p = _round_up(c_in, LANE)
    cgp = _round_up(cg, LANE)          # per-group lane-padded channels
    cb_gp = groups * cgp               # group-padded bottleneck width
    cout_p = _round_up(w_out, LANE)

    # ---- fold BN + pad/repack weights (tiny, plain JAX; padded entries zero) --
    s1, b1 = fold_bn(P["bn1"])
    w1m = P["w1"][:, :, 0, 0].reshape(groups, cg, c_in)
    w1m = jnp.pad(w1m, ((0, 0), (0, cgp - cg), (0, cin_p - c_in)))
    w1m = jnp.transpose(w1m, (2, 0, 1)).reshape(cin_p, cb_gp).astype(jnp.bfloat16)
    s1g = _group_pad_vec(s1, groups, cgp)
    b1g = _group_pad_vec(b1, groups, cgp)

    s2, b2 = fold_bn(P["bn2"])
    w2 = P["w2"].reshape(groups, cg, cg, 3, 3)            # (g, co, ci, kh, kw)
    w2 = jnp.transpose(w2, (0, 3, 4, 2, 1)).reshape(groups, 9, cg, cg)
    w2g = jnp.pad(w2, ((0, 0), (0, 0), (0, cgp - cg),
                       (0, cgp - cg))).astype(jnp.bfloat16)
    s2g = _group_pad_vec(s2, groups, cgp).reshape(groups, 1, cgp)
    b2g = _group_pad_vec(b2, groups, cgp).reshape(groups, 1, cgp)

    s3, b3 = fold_bn(P["bn3"])
    w3m = P["w3"][:, :, 0, 0].reshape(w_out, groups, cg)
    w3m = jnp.pad(w3m, ((0, cout_p - w_out), (0, 0), (0, cgp - cg)))
    w3m = jnp.transpose(w3m, (1, 2, 0)).reshape(cb_gp, cout_p).astype(jnp.bfloat16)
    s3p = jnp.pad(s3, (0, cout_p - w_out))
    b3p = jnp.pad(b3, (0, cout_p - w_out))

    if P.get("w_skip") is not None:
        wsm = P["w_skip"][:, :, 0, 0].T                   # (c_in, w_out)
        wsm = jnp.pad(wsm, ((0, cin_p - c_in),
                            (0, cout_p - w_out))).astype(jnp.bfloat16)
        ss, bs = fold_bn(P["bn_skip"])
        ssp = jnp.pad(ss, (0, cout_p - w_out))
        bsp = jnp.pad(bs, (0, cout_p - w_out))
    else:
        # TODO(synk): identity skip is routed through an identity-weight matmul
        # for kernel uniformity; a pure-add variant would skip this dot.
        wsm = jnp.pad(jnp.eye(c_in, dtype=jnp.float32),
                      ((0, cin_p - c_in), (0, cout_p - c_in))).astype(jnp.bfloat16)
        ssp = jnp.pad(jnp.ones((w_out,), jnp.float32), (0, cout_p - w_out))
        bsp = jnp.zeros((cout_p,), jnp.float32)

    # ---- conv1: 1x1 + BN + ReLU --------------------------------------------
    xf = jnp.pad(x, ((0, 0), (0, 0), (0, 0),
                     (0, cin_p - c_in))).astype(jnp.bfloat16)
    h1 = matmul_bn_relu(xf.reshape(n_b * h_in * w_sp, cin_p), w1m, s1g, b1g)

    # ---- conv2: grouped 3x3 stride-s, fused im2col, per-group matmuls -------
    ho = (h_in - 1) // stride + 1
    wo = (w_sp - 1) // stride + 1
    hq = _cdiv(h_in + 2, stride)
    wq = _cdiv(w_sp + 2, stride)
    h1s = h1.reshape(n_b, h_in, w_sp, cb_gp)
    h1p = jnp.pad(h1s, ((0, 0), (1, hq * stride - h_in - 1),
                        (1, wq * stride - w_sp - 1), (0, 0)))
    h1p = h1p.reshape(n_b, hq, stride, wq, stride, groups, cgp)
    h1p = jnp.transpose(h1p, (0, 2, 4, 1, 3, 5, 6))
    h1p = h1p.reshape(n_b, stride * stride, hq, wq, groups, cgp)
    h2 = grouped_conv3x3_bn_relu(h1p, w2g, s2g, b2g, stride=stride,
                                 n_batch=n_b, ho=ho, wo=wo, wq=wq, cgp=cgp)

    hw = ho * wo
    h2f = h2.reshape(n_b, hw, cb_gp)

    # ---- SE: tiled pool kernel + tiny FCs; scale fused into final kernel ----
    if with_se:
        se_c = P["se_w1"].shape[0]
        sew1 = P["se_w1"][:, :, 0, 0].reshape(se_c, groups, cg)
        sew1 = jnp.pad(sew1, ((0, 0), (0, 0), (0, cgp - cg))).reshape(se_c, cb_gp).T
        sew2 = P["se_w2"][:, :, 0, 0].reshape(groups, cg, se_c)
        sew2 = jnp.pad(sew2, ((0, 0), (0, cgp - cg), (0, 0))).reshape(cb_gp, se_c).T
        seb2 = _group_pad_vec(P["se_b2"], groups, cgp)
        m = global_avg_pool(h2f)[:, 0, :]                        # (N, cb_gp) f32
        a = jax.nn.relu(jnp.dot(m, sew1) + P["se_b1"])           # tiny FCs: plain JAX
        sg = jax.nn.sigmoid(jnp.dot(a, sew2) + seb2)
        sg = sg.reshape(n_b, 1, cb_gp).astype(jnp.float32)
    else:
        sg = jnp.ones((n_b, 1, cb_gp), jnp.float32)

    # ---- conv3 + BN + skip (1x1 + BN) + add + ReLU, one fused kernel --------
    xs = x[:, ::stride, ::stride, :]
    xs = jnp.pad(xs, ((0, 0), (0, 0), (0, 0),
                      (0, cin_p - c_in))).astype(jnp.bfloat16)
    xs = xs.reshape(n_b, hw, cin_p)
    out = conv3_skip_fused(h2f, sg, w3m, s3p, b3p, xs, wsm, ssp, bsp)
    out = out.reshape(n_b, ho, wo, cout_p)[..., :w_out]
    return jnp.transpose(out, (0, 3, 1, 2))                       # back to NCHW


# ----------------------------- Parameters ------------------------------------

def make_bn(key, c):
    k1, k2, k3, k4 = jax.random.split(key, 4)
    return {"gamma": 1.0 + 0.1 * jax.random.normal(k1, (c,), jnp.float32),
            "beta": 0.1 * jax.random.normal(k2, (c,), jnp.float32),
            "mean": 0.05 * jax.random.normal(k3, (c,), jnp.float32),
            "var": jax.random.uniform(k4, (c,), jnp.float32, 0.5, 1.5)}


def make_params(key, w_in, w_out, stride, group_width, bottleneck_ratio, reduction):
    w_b = int(round(w_out * bottleneck_ratio))
    groups = w_b // group_width if w_b % group_width == 0 else 1
    with_se = reduction > 1
    ks = jax.random.split(key, 12)
    P = {"cfg": {"groups": groups, "with_se": with_se, "w_b": w_b}}
    P["w1"] = 0.3 * jax.random.normal(ks[0], (w_b, w_in, 1, 1), jnp.float32)
    P["bn1"] = make_bn(ks[1], w_b)
    P["w2"] = 0.3 * jax.random.normal(ks[2], (w_b, w_b // groups, 3, 3), jnp.float32)
    P["bn2"] = make_bn(ks[3], w_b)
    if with_se:
        se_c = w_in // reduction
        P["se_w1"] = 0.3 * jax.random.normal(ks[4], (se_c, w_b, 1, 1), jnp.float32)
        P["se_b1"] = 0.1 * jax.random.normal(ks[5], (se_c,), jnp.float32)
        P["se_w2"] = 0.3 * jax.random.normal(ks[6], (w_b, se_c, 1, 1), jnp.float32)
        P["se_b2"] = 0.1 * jax.random.normal(ks[7], (w_b,), jnp.float32)
    P["w3"] = 0.3 * jax.random.normal(ks[8], (w_out, w_b, 1, 1), jnp.float32)
    P["bn3"] = make_bn(ks[9], w_out)
    if stride != 1 or w_in != w_out:
        P["w_skip"] = 0.3 * jax.random.normal(ks[10], (w_out, w_in, 1, 1), jnp.float32)
        P["bn_skip"] = make_bn(ks[11], w_out)
    else:
        P["w_skip"] = None
    return P


# ----------------------------- Pure-JAX reference ----------------------------

def ref_forward(x, P, stride):
    groups = P["cfg"]["groups"]

    def conv(h, w, stride=1, pad=0, groups=1):
        return jax.lax.conv_general_dilated(
            h, w, (stride, stride), [(pad, pad), (pad, pad)],
            feature_group_count=groups,
            dimension_numbers=("NCHW", "OIHW", "NCHW"),
            precision=jax.lax.Precision.HIGHEST)

    def bn(h, p):
        sc = p["gamma"] / jnp.sqrt(p["var"] + EPS)
        bi = p["beta"] - p["mean"] * sc
        return h * sc[None, :, None, None] + bi[None, :, None, None]

    h = jax.nn.relu(bn(conv(x, P["w1"]), P["bn1"]))
    h = jax.nn.relu(bn(conv(h, P["w2"], stride=stride, pad=1, groups=groups), P["bn2"]))
    if P["cfg"]["with_se"]:
        m = jnp.mean(h, axis=(2, 3), keepdims=True)
        a = jax.nn.relu(conv(m, P["se_w1"]) + P["se_b1"][None, :, None, None])
        a = jax.nn.sigmoid(conv(a, P["se_w2"]) + P["se_b2"][None, :, None, None])
        h = h * a
    h = bn(conv(h, P["w3"]), P["bn3"])
    if P.get("w_skip") is not None:
        skip = bn(conv(x, P["w_skip"], stride=stride), P["bn_skip"])
    else:
        skip = x
    return jax.nn.relu(h + skip)


# ----------------------------- Main -------------------------------------------

if __name__ == "__main__":
    # ResBasicBlock(w_in=4, w_out=8, stride=2, group_width=4,
    #               bottleneck_ratio=1.0, reduction=2)
    w_in, w_out, stride = 4, 8, 2
    group_width, bottleneck_ratio, reduction = 4, 1.0, 2
    N, H, W = 2, 16, 16

    key = jax.random.PRNGKey(0)
    P = make_params(key, w_in, w_out, stride, group_width, bottleneck_ratio, reduction)
    x = jax.random.normal(jax.random.fold_in(key, 999), (N, w_in, H, W), jnp.float32)

    out = res_basic_block_forward(x, P, stride)
    out = jax.block_until_ready(out)

    ref = ref_forward(x, P, stride)
    assert out.shape == (N, w_out, H // stride, W // stride), out.shape
    # bf16 matmul tiles with f32 accumulation -> relaxed tolerance vs f32 reference
    assert jnp.allclose(out, ref, rtol=5e-2, atol=8e-2), \
        f"max abs err {float(jnp.max(jnp.abs(out - ref)))}"

    print("KERNEL_OK")
</pallas_src>

<mosaic_0001>
module attributes {stable_mosaic.version = 11 : i64} {
  func.func @_mm_bn_relu_kernel(%arg0: i32, %arg1: memref<256x128xbf16, #tpu.memory_space<vmem>>, %arg2: memref<128x256xbf16, #tpu.memory_space<vmem>>, %arg3: memref<1x256xf32, #tpu.memory_space<vmem>>, %arg4: memref<1x256xf32, #tpu.memory_space<vmem>>, %arg5: memref<256x256xbf16, #tpu.memory_space<vmem>>) attributes {dimension_semantics = [#tpu.dimension_semantics<parallel>], iteration_bounds = array<i64: 2>, scalar_prefetch = 0 : i64, scratch_operands = 0 : i64, tpu.core_type = #tpu.core_type<tc>, window_params = [{transform_indices = @transform_0, window_bounds = array<i64: 256, 128>}, {pipeline_mode = #tpu.pipeline_mode<synchronous>, transform_indices = @transform_1, window_bounds = array<i64: 128, 256>}, {pipeline_mode = #tpu.pipeline_mode<synchronous>, transform_indices = @transform_2, window_bounds = array<i64: 1, 256>}, {pipeline_mode = #tpu.pipeline_mode<synchronous>, transform_indices = @transform_3, window_bounds = array<i64: 1, 256>}, {transform_indices = @transform_4, window_bounds = array<i64: 256, 256>}]} {
    %c0 = arith.constant 0 : index
    %c0_0 = arith.constant 0 : index
    %0 = vector.load %arg1[%c0, %c0_0] : memref<256x128xbf16, #tpu.memory_space<vmem>>, vector<256x128xbf16>
    %c0_1 = arith.constant 0 : index
    %c0_2 = arith.constant 0 : index
    %1 = vector.load %arg2[%c0_1, %c0_2] : memref<128x256xbf16, #tpu.memory_space<vmem>>, vector<128x256xbf16>
    %cst = arith.constant dense<0.000000e+00> : vector<256x256xf32>
    %2 = tpu.matmul %0, %1, %cst {dimension_numbers = #tpu.dot_dimension_numbers<[1], [0], [0], [1], [0, 0, 1, 1], [], []>} : vector<256x128xbf16>, vector<128x256xbf16>, vector<256x256xf32> -> vector<256x256xf32>
    %c0_3 = arith.constant 0 : index
    %c0_4 = arith.constant 0 : index
    %3 = vector.load %arg3[%c0_3, %c0_4] : memref<1x256xf32, #tpu.memory_space<vmem>>, vector<1x256xf32>
    %4 = vector.broadcast %3 : vector<1x256xf32> to vector<256x256xf32>
    %5 = arith.mulf %2, %4 : vector<256x256xf32>
    %c0_5 = arith.constant 0 : index
    %c0_6 = arith.constant 0 : index
    %6 = vector.load %arg4[%c0_5, %c0_6] : memref<1x256xf32, #tpu.memory_space<vmem>>, vector<1x256xf32>
    %7 = vector.broadcast %6 : vector<1x256xf32> to vector<256x256xf32>
    %8 = arith.addf %5, %7 : vector<256x256xf32>
    %cst_7 = arith.constant 0.000000e+00 : f32
    %9 = vector.broadcast %cst_7 : f32 to vector<256x256xf32>
    %10 = arith.maximumf %8, %9 : vector<256x256xf32>
    %11 = arith.truncf %10 : vector<256x256xf32> to vector<256x256xbf16>
    %c0_8 = arith.constant 0 : index
    %c0_9 = arith.constant 0 : index
    %12 = vector.load %arg5[%c0_8, %c0_9] : memref<256x256xbf16, #tpu.memory_space<vmem>>, vector<256x256xbf16>
    tpu.vector_store %arg5[%c0_8, %c0_9], %11 {strides = array<i32>} : memref<256x256xbf16, #tpu.memory_space<vmem>>, vector<256x256xbf16>,
    return
  }
  func.func @transform_0(%arg0: i32) -> (i32, i32) {
    %c0_i32 = arith.constant 0 : i32
    %c0_i32_0 = arith.constant 0 : i32
    return %arg0, %c0_i32 : i32, i32
  }
  func.func @transform_1(%arg0: i32) -> (i32, i32) {
    %c0_i32 = arith.constant 0 : i32
    %c0_i32_0 = arith.constant 0 : i32
    %c0_i32_1 = arith.constant 0 : i32
    return %c0_i32, %c0_i32_0 : i32, i32
  }
  func.func @transform_2(%arg0: i32) -> (i32, i32) {
    %c0_i32 = arith.constant 0 : i32
    %c0_i32_0 = arith.constant 0 : i32
    %c0_i32_1 = arith.constant 0 : i32
    return %c0_i32, %c0_i32_0 : i32, i32
  }
  func.func @transform_3(%arg0: i32) -> (i32, i32) {
    %c0_i32 = arith.constant 0 : i32
    %c0_i32_0 = arith.constant 0 : i32
    %c0_i32_1 = arith.constant 0 : i32
    return %c0_i32, %c0_i32_0 : i32, i32
  }
  func.func @transform_4(%arg0: i32) -> (i32, i32) {
    %c0_i32 = arith.constant 0 : i32
    %c0_i32_0 = arith.constant 0 : i32
    return %arg0, %c0_i32 : i32, i32
  }
}

</mosaic_0001>

<bundles_post_ra>
// kernel: tpu_custom_call.1
= control target key start
LH: loop header
LB: loop body
LE: loop exit
PB: predicated region body
PF: predicated region fallthrough
CT: control target
= control target key end

     0   :  { %9 = vsyncpa [#allocation3], 0  ;;  %s1830_s0 = inlined_call_operand.hbm [shape: bf16[512,128], index: 0, kind: input, shape index: {}]   ;;  %s1831_s1 = inlined_call_operand.hbm [shape: bf16[128,256], index: 1, kind: input, shape index: {}]   ;;  %s1832_s2 = inlined_call_operand.hbm [shape: f32[1,256], index: 2, kind: input, shape index: {}]   ;;  %s1833_s3 = inlined_call_operand.vmem [shape: f32[1,256], index: 3, kind: input, shape index: {}]   ;;  %s1834_s4 = inlined_call_operand.hbm [shape: bf16[512,256], index: 4, kind: output, shape index: {}]  }
   0x1   :  { %11 = vsyncpa [#allocation3 + $0x1], 0 }
   0x2   :  { %12 = vsyncpa [#allocation6], 0 }
   0x3   :  { %13 = vsyncpa [#allocation4], 0 }
   0x4   :  { %15 = vsyncpa [#allocation4 + $0x1], 0  ;;  %s1496_s15 = smov 0   ;;  %s1498_s16 = smov 0  }
   0x5   :  { %s1500_s17 = smov 0   ;;  %s1502_s18 = smov 0  }
   0x6 LB: > { %s1517_s19 = sadd.s32 4294967295, %s1461_s18   ;;  %s1030_s20 = sadd.s32 4294967294, %s1461_s18   ;;  %s1461_s18 = sphi %s1502_s18, %s1844_s18   ;;  %s1457_s17 = sphi %s1500_s17, %s1843_s17   ;;  %s1453_s16 = sphi %s1498_s16, %s1842_s16   ;;  %s1449_s15 = sphi %s1496_s15, %s1841_s15  }
   0x7   : > { %p41_p0 = scmp.ne.s32.totalorder %s1453_s16, %s1449_s15  ;;  %p42_p1 = scmp.eq.s32.totalorder %s1517_s19, 0 }
   0x8   : > { %p128_p2 = scmp.eq.s32.totalorder %s1517_s19, 1  ;;  %p134_p3 = scmp.eq.s32.totalorder %s1030_s20, 1 }
   0x9   : > { %p1526_p4 = por %p42_p1, %p41_p0  ;;  %p1031_p5 = scmp.ge.s32.totalorder %s1461_s18, 1 }
   0xa   : > { %p1531_p6 = por %p134_p3, %p41_p0  ;;  %p141_p7 = scmp.lt.s32.totalorder %s1461_s18, 3 }
   0xb   : > { %s152_s25 = sshll.u32 %s1831_s1, 4  ;;  %s1463_s27 = smov [#allocation5]   ;;  %s153_s25 = int_to_ptr.hbm [resolvable:$true] %s152_s25 }
   0xc   : > { %p1539_p8 = pnand %p1031_p5, %p141_p7  ;;  %s154_s28 = sshll.u32 %s1463_s27, 4  ;;  %s155_s28 = int_to_ptr.vmem [resolvable:$true] %s154_s28 }
   0xd   : > { %s167_s5 = sshll.u32 %s1832_s2, 4  ;;  %s1464_s6 = smov 128   ;;  %s168_s5 = int_to_ptr.hbm [resolvable:$true] %s167_s5 }
   0xe   : > { %p1240_p9 = pneg %p1539_p8  ;;  %s1465_s7 = smov 8  }
   0xf   : > { %s1466_s8 = smov [#allocation7]   ;;  %s1552_s10 = sadd.s32 1, %s1461_s18  }
  0x10   : > { %p1241_p10 = pnand %p1240_p9, %p42_p1  ;;  %s169_s9 = sshll.u32 %s1466_s8, 4  ;;  %s170_s9 = int_to_ptr.vmem [resolvable:$true] %s169_s9 }
  0x11   : > { %s28_s11 = sadd.s32 1, %s1457_s17  ;;  %s25_s12 = ssub.s32 %s1461_s18, %s1552_s10 }
  0x12   : > { %1243 = dma.hbm_to_vmem [thread:$0]  (!%p1241_p10), %s153_s25, 2048, %s155_s28, [#allocation6], %s1464_s6, %s1464_s6, %s1465_s7  }
  0x13   : > { %1246 = dma.hbm_to_vmem [thread:$0]  (!%p1241_p10), %s168_s5, 32, %s170_s9, [#allocation6]  }
  0x14   : > { %p35_p12 = scmp.ne.s32.totalorder %s1457_s17, %s1453_s16  ;;  %p26_p13 = scmp.eq.s32.totalorder %s25_s12, 0 }
  0x15   : > { %p36_p0 = scmp.eq.s32.totalorder %s1461_s18, 0  ;;  %p1257_p5 = scmp.lt.s32.totalorder %s1461_s18, 2 }
  0x16   : > { %p1562_p3 = por %p128_p2, %p35_p12  ;;  %s183_s20 = sand.u32 1, %s1457_s17  }
  0x17   : > { %s1568_s14 = scalar_select %p26_p13, %s1457_s17, %s28_s11  }
  0x18   : > { %p37_p7 = por %p36_p0, %p35_p12  ;;  %s1035_s23 = sshll.u32 %s183_s20, 7 }
  0x19   : > { %s1177_s24 = sshll.u32 %s1461_s18, 7  ;;  %s187_s29 = scalar_lea.vmem [#allocation2], %s1035_s23 }
  0x1a   : > { %s192_s28 = scalar_lea.hbm %s1830_s0, %s1177_s24  ;;  %s195_s30 = sshll.u32 %s187_s29, 4  ;;  %s196_s30 = int_to_ptr.vmem [resolvable:$true] %s195_s30 }
  0x1b   : > { %s193_s5 = sshll.u32 %s192_s28, 4  ;;  %p1575_p2 = pnand %p1257_p5, %p37_p7  ;;  %s194_s5 = int_to_ptr.hbm [resolvable:$true] %s193_s5 }
  0x1c   : > { %s184_s7 = scalar_lea.sflag [#allocation3], %s183_s20  ;;  %s1361_s8 = sshra.s32 %s194_s5, 4  ;;  %s1362_s8 = int_to_ptr.hbm [resolvable:$true] %s1361_s8 }
  0x1d   : > { %s1363_s9 = scalar_lea.hbm %s1362_s8, 128  ;;  %p1365_p10 = pneg %p1575_p2 }
  0x1e   : > { %p1364_p9 = scmp.ne.s32.totalorder %s1362_s8, %s1363_s9  ;;  %s1368_s23 = scalar_lea.hbm %s1830_s0, 256 }
  0x1f   : > { %p1369_p0 = scmp.lt.s32.totalorder %s1362_s8, %s1830_s0  ;;  %p1370_p5 = scmp.lt.s32.totalorder %s1368_s23, %s1363_s9 }
  0x20   : > { %p1366_p12 = pnand %p1365_p10, %p1364_p9 }
  0x21   : > { %p1371_p7 = por %p1370_p5, %p1369_p0 }
  0x22   : > { %p1367_p13 = pneg %p1366_p12 }
  0x24   : > { %p1372_p11 = pnand %p1371_p7, %p1367_p13 }
  0x26   : > { %1375 = shalt.err (!%p1372_p11)
}
  0x27   : > { %s1467_s20 = smov 64   ;;  %s1468_s27 = smov 4  }
  0x28   : > { %1250 = dma.hbm_to_vmem [thread:$0]  (!%p1575_p2), %s194_s5, 2048, %s196_s30, %s184_s7, %s1467_s20, %s1467_s20, %s1468_s27  }
  0x29   : > { %207 = sbr.rel (%p1539_p8) target bundleno = 348 (0x15c), region = 36  ;;  %s1592_s28 = sand.u32 (!%p1539_p8), 1, %s1453_s16  }
  0x2a   : > { %s1039_s29 = sshll.u32 (!%p1539_p8), %s1592_s28, 7  ;;  %s210_s8 = scalar_lea.sflag (!%p1539_p8), [#allocation3], %s1592_s28 }
  0x2b   : > { %s1596_s9 = scalar_lea.vmem (!%p1539_p8), [#allocation2], %s1039_s29 }
  0x2e   : > { %1436 = dma.done.wait (%p1526_p4), %s210_s8, 2048  }
  0x2f   : > { %1438 = vsyncadd (%p1526_p4), %s210_s8, 4294965248 }
  0x30   : > { %1440 = dma.done.wait (%p42_p1), [#allocation6], 2080  }
  0x31   : > { %1442 = vsyncadd (%p42_p1), [#allocation6], 4294965216  ;;  %v1165_v0 = vld [vmem:[#allocation5 + $0x70] sm:$0xf]  ;;  %v1209_v1 = vld [vmem:[#allocation5 + $0x74] sm:$0xf0] }
  0x32   : > { %v1208_v2 = vld [vmem:[#allocation5 + $0x74] sm:$0xf]  ;;  %v1166_v3 = vor.u32 %v1209_v1, %v1165_v0  ;;  %v1167_v4 = vld [vmem:[#allocation5 + $0x78] sm:$0xf0]  ;;  %v1157_v5 = vld [vmem:[#allocation5 + $0x60] sm:$0xf] }
  0x33   : > { %v1207_v6 = vld [vmem:[#allocation5 + $0x64] sm:$0xf0]  ;;  %v1170_v7 = vor.u32 %v1208_v2, %v1167_v4  ;;  %v1206_v8 = vld [vmem:[#allocation5 + $0x64] sm:$0xf]  ;;  %v1159_v9 = vld [vmem:[#allocation5 + $0x68] sm:$0xf0] }
  0x34   : > { %475 = vmatpush.bf16.msra.mxu0 %v1166_v3  ;;  %1212 = vmatpush.bf16.msra.mxu2 %v1166_v3  ;;  %v1158_v10 = vor.u32 %v1207_v6, %v1157_v5  ;;  %v1162_v11 = vor.u32 %v1206_v8, %v1159_v9  ;;  %v1149_v12 = vld [vmem:[#allocation5 + $0x50] sm:$0xf]  ;;  %v1205_v13 = vld [vmem:[#allocation5 + $0x54] sm:$0xf0]  ;;  %v1204_v14 = vld [vmem:[#allocation5 + $0x54] sm:$0xf] }
  0x35   : > { %564 = vmatpush.bf16.msra.mxu1 %v1170_v7  ;;  %1220 = vmatpush.bf16.msra.mxu3 %v1170_v7  ;;  %v1151_v15 = vld [vmem:[#allocation5 + $0x58] sm:$0xf0]  ;;  %v1150_v16 = vor.u32 %v1205_v13, %v1149_v12  ;;  %v1141_v18 = vld [vmem:[#allocation5 + $0x40] sm:$0xf]  ;;  %v1203_v19 = vld [vmem:[#allocation5 + $0x44] sm:$0xf0] }
  0x36   : > { %v1154_v17 = vor.u32 %v1204_v14, %v1151_v15  ;;  %v1202_v20 = vld [vmem:[#allocation5 + $0x44] sm:$0xf]  ;;  %v1143_v21 = vld [vmem:[#allocation5 + $0x48] sm:$0xf0]  ;;  %v1142_v22 = vor.u32 %v1203_v19, %v1141_v18  ;;  %v1133_v24 = vld [vmem:[#allocation5 + $0x30] sm:$0xf] }
  0x37   : > { %v1146_v23 = vor.u32 %v1202_v20, %v1143_v21  ;;  %v1201_v25 = vld [vmem:[#allocation5 + $0x34] sm:$0xf0]  ;;  %v1200_v26 = vld [vmem:[#allocation5 + $0x34] sm:$0xf]  ;;  %v1135_v27 = vld [vmem:[#allocation5 + $0x38] sm:$0xf0] }
  0x38   : > { %476 = vmatpush.bf16.msra.mxu0 %v1158_v10  ;;  %1213 = vmatpush.bf16.msra.mxu2 %v1158_v10  ;;  %v1134_v28 = vor.u32 %v1201_v25, %v1133_v24  ;;  %v1138_v29 = vor.u32 %v1200_v26, %v1135_v27  ;;  %v1125_v30 = vld [vmem:[#allocation5 + $0x20] sm:$0xf]  ;;  %v1199_v31 = vld [vmem:[#allocation5 + $0x24] sm:$0xf0]  ;;  %v1198_v32 = vld [vmem:[#allocation5 + $0x24] sm:$0xf] }
  0x39   : > { %565 = vmatpush.bf16.msra.mxu1 %v1162_v11  ;;  %1221 = vmatpush.bf16.msra.mxu3 %v1162_v11  ;;  %v1127_v33 = vld [vmem:[#allocation5 + $0x28] sm:$0xf0]  ;;  %v1126_v34 = vor.u32 %v1199_v31, %v1125_v30  ;;  %v1117_v36 = vld [vmem:[#allocation5 + $0x10] sm:$0xf]  ;;  %v1197_v37 = vld [vmem:[#allocation5 + $0x14] sm:$0xf0] }
  0x3a   : > { %v1130_v35 = vor.u32 %v1198_v32, %v1127_v33  ;;  %v1196_v38 = vld [vmem:[#allocation5 + $0x14] sm:$0xf]  ;;  %v1119_v39 = vld [vmem:[#allocation5 + $0x18] sm:$0xf0]  ;;  %v1118_v40 = vor.u32 %v1197_v37, %v1117_v36  ;;  %v1109_v42 = vld [vmem:[#allocation5] sm:$0xf] }
  0x3b   : > { %v1122_v41 = vor.u32 %v1196_v38, %v1119_v39  ;;  %v1195_v43 = vld [vmem:[#allocation5 + $0x4] sm:$0xf0]  ;;  %v1194_v44 = vld [vmem:[#allocation5 + $0x4] sm:$0xf]  ;;  %v1111_v45 = vld [vmem:[#allocation5 + $0x8] sm:$0xf0] }
  0x3c   : > { %477 = vmatpush.bf16.msra.mxu0 %v1150_v16  ;;  %1214 = vmatpush.bf16.msra.mxu2 %v1150_v16  ;;  %v1110_v46 = vor.u32 %v1195_v43, %v1109_v42  ;;  %v1114_v47 = vor.u32 %v1194_v44, %v1111_v45  ;;  %v1178_v48 = vld [vmem:[%s1596_s9] sm:$0xff]  ;;  %v1179_v50 = vld [vmem:[%s1596_s9 + $0x8] sm:$0xff]  ;;  %v1180_v52 = vld [vmem:[%s1596_s9 + $0x10] sm:$0xff]  ;;  %s1042_s30 = sshll.u32 %s1592_s28, 8  ;;  %s1211_s6 = sshll.u32 %s1517_s19, 8 }
  0x3d   : > { %566 = vmatpush.bf16.msra.mxu1 %v1154_v17  ;;  %1222 = vmatpush.bf16.msra.mxu3 %v1154_v17  ;;  %v1186_v49 = vld [vmem:[%s1596_s9 + $0x40] sm:$0xff]  ;;  %v1187_v51 = vld [vmem:[%s1596_s9 + $0x48] sm:$0xff]  ;;  %v1188_v53 = vld [vmem:[%s1596_s9 + $0x50] sm:$0xff]  ;;  %s1642_s5 = scalar_lea.vmem [#allocation8], %s1042_s30  ;;  %s934_s12 = scalar_lea.hbm %s1834_s4, %s1211_s6 }
  0x3e   : > { %v1181_v54 = vld [vmem:[%s1596_s9 + $0x18] sm:$0xff]  ;;  %v1182_v56 = vld [vmem:[%s1596_s9 + $0x20] sm:$0xff]  ;;  %v1183_v58 = vld [vmem:[%s1596_s9 + $0x28] sm:$0xff]  ;;  %s935_s19 = sshll.u32 %s1642_s5, 4  ;;  %s937_s23 = sshll.u32 %s934_s12, 4  ;;  %s936_s19 = int_to_ptr.vmem [resolvable:$true] %s935_s19  ;;  %s938_s23 = int_to_ptr.hbm [resolvable:$true] %s937_s23 }
  0x3f   : > { %v1189_v55 = vld [vmem:[%s1596_s9 + $0x58] sm:$0xff]  ;;  %v1190_v57 = vld [vmem:[%s1596_s9 + $0x60] sm:$0xff]  ;;  %v1191_v59 = vld [vmem:[%s1596_s9 + $0x68] sm:$0xff]  ;;  %s922_s24 = scalar_lea.sflag [#allocation4], %s1592_s28  ;;  %s1405_s25 = sshra.s32 %s938_s23, 4  ;;  %s1406_s25 = int_to_ptr.hbm [resolvable:$true] %s1405_s25 }
  0x40   : > { %478 = vmatpush.bf16.msra.mxu0 %v1142_v22  ;;  %1215 = vmatpush.bf16.msra.mxu2 %v1142_v22  ;;  %v1184_v60 = vld [vmem:[%s1596_s9 + $0x30] sm:$0xff]  ;;  %v1185_v62 = vld [vmem:[%s1596_s9 + $0x38] sm:$0xff]  ;;  %v653_v0 = vld [vmem:[#allocation7] sm:$0x3]  ;;  %s1407_s20 = scalar_lea.hbm %s1406_s25, 256  ;;  %s1411_s8 = scalar_lea.hbm %s1834_s4, 512 }
  0x41   : > { %567 = vmatpush.bf16.msra.mxu1 %v1146_v23  ;;  %1223 = vmatpush.bf16.msra.mxu3 %v1146_v23  ;;  %v1192_v61 = vld [vmem:[%s1596_s9 + $0x70] sm:$0xff]  ;;  %v1193_v63 = vld [vmem:[%s1596_s9 + $0x78] sm:$0xff]  ;;  %v723_v1 = vld [vmem:[%s1833_s3] sm:$0x3]  ;;  %v1625_v2 = vperm.slane %v653_v0, 0  ;;  %v1627_v3 = vperm.slane %v653_v0, 1  ;;  %p1408_p1 = scmp.ne.s32.totalorder %s1406_s25, %s1407_s20  ;;  %p1412_p11 = scmp.lt.s32.totalorder %s1406_s25, %s1834_s4 }
  0x42   : > { %v1629_v4 = vperm.slane %v723_v1, 0  ;;  %v1631_v6 = vperm.slane %v723_v1, 1  ;;  %p1413_p2 = scmp.lt.s32.totalorder %s1411_s8, %s1407_s20 }
  0x43   : > { %p1409_p4 = pnand %p1408_p1, %p1562_p3 }
  0x44   : > { %479 = vmatpush.bf16.msra.mxu0 %v1134_v28  ;;  %1216 = vmatpush.bf16.msra.mxu2 %v1134_v28  ;;  %p1414_p9 = por %p1413_p2, %p1412_p11 }
  0x45   : > { %568 = vmatpush.bf16.msra.mxu1 %v1138_v29  ;;  %1224 = vmatpush.bf16.msra.mxu3 %v1138_v29  ;;  %p1410_p8 = pneg %p1409_p4 }
  0x47   : > { %p1415_p10 = pnand %p1414_p9, %p1410_p8 }
  0x48   : > { %480 = vmatpush.bf16.msra.mxu0 %v1126_v34  ;;  %1217 = vmatpush.bf16.msra.mxu2 %v1126_v34 }
  0x49   : > { %569 = vmatpush.bf16.msra.mxu1 %v1130_v35  ;;  %1225 = vmatpush.bf16.msra.mxu3 %v1130_v35 }
  0x4c   : > { %481 = vmatpush.bf16.msra.mxu0 %v1118_v40  ;;  %1218 = vmatpush.bf16.msra.mxu2 %v1118_v40 }
  0x4d   : > { %570 = vmatpush.bf16.msra.mxu1 %v1122_v41  ;;  %1226 = vmatpush.bf16.msra.mxu3 %v1122_v41 }
  0x50   : > { %482 = vmatpush.bf16.msra.mxu0 %v1110_v46  ;;  %1219 = vmatpush.bf16.msra.mxu2 %v1110_v46 }
  0x51   : > { %571 = vmatpush.bf16.msra.mxu1 %v1114_v47  ;;  %1227 = vmatpush.bf16.msra.mxu3 %v1114_v47 }
  0x53   : > { %483 = vmatmul.bf16.vlgmr.msra.gmra.mxu0 %v1178_v48  ;;  %523 = vmatmul.bf16.vlgmr.msra.gmra.mxu2 %v1186_v49 }
  0x54   : > { %572 = vmatmul.bf16.vlgmr.msra.gmra.mxu1 %v1178_v48  ;;  %612 = vmatmul.bf16.vlgmr.msra.gmra.mxu3 %v1186_v49 }
  0x63   : > { %488 = vmatmul.bf16.gmra.mxu0 %v1179_v50  ;;  %528 = vmatmul.bf16.gmra.mxu2 %v1187_v51 }
  0x64   : > { %577 = vmatmul.bf16.gmra.mxu1 %v1179_v50  ;;  %617 = vmatmul.bf16.gmra.mxu3 %v1187_v51 }
  0x73   : > { %493 = vmatmul.bf16.gmra.mxu0 %v1180_v52  ;;  %533 = vmatmul.bf16.gmra.mxu2 %v1188_v53 }
  0x74   : > { %582 = vmatmul.bf16.gmra.mxu1 %v1180_v52  ;;  %622 = vmatmul.bf16.gmra.mxu3 %v1188_v53 }
  0x83   : > { %498 = vmatmul.bf16.gmra.mxu0 %v1181_v54  ;;  %538 = vmatmul.bf16.gmra.mxu2 %v1189_v55 }
  0x84   : > { %587 = vmatmul.bf16.gmra.mxu1 %v1181_v54  ;;  %627 = vmatmul.bf16.gmra.mxu3 %v1189_v55 }
  0x93   : > { %503 = vmatmul.bf16.gmra.mxu0 %v1182_v56  ;;  %543 = vmatmul.bf16.gmra.mxu2 %v1190_v57 }
  0x94   : > { %592 = vmatmul.bf16.gmra.mxu1 %v1182_v56  ;;  %632 = vmatmul.bf16.gmra.mxu3 %v1190_v57 }
  0xa3   : > { %508 = vmatmul.bf16.gmra.mxu0 %v1183_v58  ;;  %548 = vmatmul.bf16.gmra.mxu2 %v1191_v59 }
  0xa4   : > { %597 = vmatmul.bf16.gmra.mxu1 %v1183_v58  ;;  %637 = vmatmul.bf16.gmra.mxu3 %v1191_v59 }
  0xb3   : > { %513 = vmatmul.bf16.gmra.mxu0 %v1184_v60  ;;  %553 = vmatmul.bf16.gmra.mxu2 %v1192_v61 }
  0xb4   : > { %602 = vmatmul.bf16.gmra.mxu1 %v1184_v60  ;;  %642 = vmatmul.bf16.gmra.mxu3 %v1192_v61 }
  0xc3   : > { %518 = vmatmul.bf16.gmra.mxu0 %v1185_v62  ;;  %558 = vmatmul.bf16.gmra.mxu2 %v1193_v63 }
  0xc4   : > { %607 = vmatmul.bf16.gmra.mxu1 %v1185_v62  ;;  %647 = vmatmul.bf16.gmra.mxu3 %v1193_v63 }
  0xd0   : > { %v484_v5 = vpop.f32.mrf.mxu0 }
  0xd1   : > { %v659_v7 = vmul.f32 %v1625_v2, %v484_v5  ;;  %v573_v8 = vpop.f32.mrf.mxu1 }
  0xd2   : > { %v660_v9 = vmul.f32 %v1627_v3, %v573_v8 }
  0xd3   : > { %v729_v10 = vadd.f32 %v1629_v4, %v659_v7 }
  0xd4   : > { %v730_v11 = vadd.f32 %v1631_v6, %v660_v9 }
  0xd5   : > { %v793_v12 = vmax.f32 %v729_v10, 0.0 }
  0xd6   : > { %v794_v13 = vmax.f32 %v730_v11, 0.0  ;;  %v524_v14 = vpop.f32.mrf.mxu2 }
  0xd7   : > { %v691_v15 = vmul.f32 %v1625_v2, %v524_v14  ;;  %v613_v16 = vpop.f32.mrf.mxu3 }
  0xd8   : > { %v857_v17 = vpack.c.bf16 %v794_v13, %v793_v12  ;;  %v692_v18 = vmul.f32 %v1627_v3, %v613_v16  ;;  %v486_v19 = vpop.f32.mrf.mxu0 }
  0xd9   : > { %v761_v20 = vadd.f32 %v1629_v4, %v691_v15  ;;  %v661_v21 = vmul.f32 %v1625_v2, %v486_v19  ;;  %v575_v22 = vpop.f32.mrf.mxu1 }
  0xda   : > { %889 = vst [vmem:[%s1642_s5] sm:$0xff] %v857_v17  ;;  %v762_v23 = vadd.f32 %v1631_v6, %v692_v18  ;;  %v662_v24 = vmul.f32 %v1627_v3, %v575_v22 }
  0xdb   : > { %v825_v25 = vmax.f32 %v761_v20, 0.0  ;;  %v731_v26 = vadd.f32 %v1629_v4, %v661_v21 }
  0xdc   : > { %v826_v27 = vmax.f32 %v762_v23, 0.0  ;;  %v732_v28 = vadd.f32 %v1631_v6, %v662_v24 }
  0xdd   : > { %v795_v29 = vmax.f32 %v731_v26, 0.0 }
  0xde   : > { %v873_v30 = vpack.c.bf16 %v826_v27, %v825_v25  ;;  %v796_v31 = vmax.f32 %v732_v28, 0.0  ;;  %v526_v32 = vpop.f32.mrf.mxu2 }
  0xdf   : > { %v693_v33 = vmul.f32 %v1625_v2, %v526_v32  ;;  %v615_v34 = vpop.f32.mrf.mxu3 }
  0xe0   : > { %905 = vst [vmem:[%s1642_s5 + $0x80] sm:$0xff] %v873_v30  ;;  %v858_v35 = vpack.c.bf16 %v796_v31, %v795_v29  ;;  %v694_v36 = vmul.f32 %v1627_v3, %v615_v34  ;;  %v489_v37 = vpop.f32.mrf.mxu0 }
  0xe1   : > { %v763_v38 = vadd.f32 %v1629_v4, %v693_v33  ;;  %v663_v39 = vmul.f32 %v1625_v2, %v489_v37  ;;  %v578_v40 = vpop.f32.mrf.mxu1 }
  0xe2   : > { %890 = vst [vmem:[%s1642_s5 + $0x8] sm:$0xff] %v858_v35  ;;  %v764_v41 = vadd.f32 %v1631_v6, %v694_v36  ;;  %v664_v42 = vmul.f32 %v1627_v3, %v578_v40 }
  0xe3   : > { %v827_v43 = vmax.f32 %v763_v38, 0.0  ;;  %v733_v44 = vadd.f32 %v1629_v4, %v663_v39 }
  0xe4   : > { %v828_v45 = vmax.f32 %v764_v41, 0.0  ;;  %v734_v46 = vadd.f32 %v1631_v6, %v664_v42 }
  0xe5   : > { %v797_v47 = vmax.f32 %v733_v44, 0.0 }
  0xe6   : > { %v874_v48 = vpack.c.bf16 %v828_v45, %v827_v43  ;;  %v798_v49 = vmax.f32 %v734_v46, 0.0  ;;  %v529_v50 = vpop.f32.mrf.mxu2 }
  0xe7   : > { %v695_v51 = vmul.f32 %v1625_v2, %v529_v50  ;;  %v618_v52 = vpop.f32.mrf.mxu3 }
  0xe8   : > { %906 = vst [vmem:[%s1642_s5 + $0x88] sm:$0xff] %v874_v48  ;;  %v859_v53 = vpack.c.bf16 %v798_v49, %v797_v47  ;;  %v696_v54 = vmul.f32 %v1627_v3, %v618_v52  ;;  %v491_v55 = vpop.f32.mrf.mxu0 }
  0xe9   : > { %v765_v56 = vadd.f32 %v1629_v4, %v695_v51  ;;  %v665_v57 = vmul.f32 %v1625_v2, %v491_v55  ;;  %v580_v58 = vpop.f32.mrf.mxu1 }
  0xea   : > { %891 = vst [vmem:[%s1642_s5 + $0x10] sm:$0xff] %v859_v53  ;;  %v766_v59 = vadd.f32 %v1631_v6, %v696_v54  ;;  %v666_v60 = vmul.f32 %v1627_v3, %v580_v58 }
  0xeb   : > { %v829_v61 = vmax.f32 %v765_v56, 0.0  ;;  %v735_v62 = vadd.f32 %v1629_v4, %v665_v57 }
  0xec   : > { %v830_v63 = vmax.f32 %v766_v59, 0.0  ;;  %v736_v0 = vadd.f32 %v1631_v6, %v666_v60 }
  0xed   : > { %v799_v1 = vmax.f32 %v735_v62, 0.0 }
  0xee   : > { %v875_v5 = vpack.c.bf16 %v830_v63, %v829_v61  ;;  %v800_v7 = vmax.f32 %v736_v0, 0.0  ;;  %v531_v8 = vpop.f32.mrf.mxu2 }
  0xef   : > { %v697_v9 = vmul.f32 %v1625_v2, %v531_v8  ;;  %v620_v10 = vpop.f32.mrf.mxu3 }
  0xf0   : > { %907 = vst [vmem:[%s1642_s5 + $0x90] sm:$0xff] %v875_v5  ;;  %v860_v11 = vpack.c.bf16 %v800_v7, %v799_v1  ;;  %v698_v12 = vmul.f32 %v1627_v3, %v620_v10  ;;  %v494_v13 = vpop.f32.mrf.mxu0 }
  0xf1   : > { %v767_v14 = vadd.f32 %v1629_v4, %v697_v9  ;;  %v667_v15 = vmul.f32 %v1625_v2, %v494_v13  ;;  %v583_v16 = vpop.f32.mrf.mxu1 }
  0xf2   : > { %892 = vst [vmem:[%s1642_s5 + $0x18] sm:$0xff] %v860_v11  ;;  %v768_v17 = vadd.f32 %v1631_v6, %v698_v12  ;;  %v668_v18 = vmul.f32 %v1627_v3, %v583_v16 }
  0xf3   : > { %v831_v19 = vmax.f32 %v767_v14, 0.0  ;;  %v737_v20 = vadd.f32 %v1629_v4, %v667_v15 }
  0xf4   : > { %v832_v21 = vmax.f32 %v768_v17, 0.0  ;;  %v738_v22 = vadd.f32 %v1631_v6, %v668_v18 }
  0xf5   : > { %v801_v23 = vmax.f32 %v737_v20, 0.0 }
  0xf6   : > { %v876_v24 = vpack.c.bf16 %v832_v21, %v831_v19  ;;  %v802_v25 = vmax.f32 %v738_v22, 0.0  ;;  %v534_v26 = vpop.f32.mrf.mxu2 }
  0xf7   : > { %v699_v27 = vmul.f32 %v1625_v2, %v534_v26  ;;  %v623_v28 = vpop.f32.mrf.mxu3 }
  0xf8   : > { %908 = vst [vmem:[%s1642_s5 + $0x98] sm:$0xff] %v876_v24  ;;  %v861_v29 = vpack.c.bf16 %v802_v25, %v801_v23  ;;  %v700_v30 = vmul.f32 %v1627_v3, %v623_v28  ;;  %v496_v31 = vpop.f32.mrf.mxu0 }
  0xf9   : > { %v769_v32 = vadd.f32 %v1629_v4, %v699_v27  ;;  %v669_v33 = vmul.f32 %v1625_v2, %v496_v31  ;;  %v585_v34 = vpop.f32.mrf.mxu1 }
  0xfa   : > { %893 = vst [vmem:[%s1642_s5 + $0x20] sm:$0xff] %v861_v29  ;;  %v770_v35 = vadd.f32 %v1631_v6, %v700_v30  ;;  %v670_v36 = vmul.f32 %v1627_v3, %v585_v34 }
  0xfb   : > { %v833_v37 = vmax.f32 %v769_v32, 0.0  ;;  %v739_v38 = vadd.f32 %v1629_v4, %v669_v33 }
  0xfc   : > { %v834_v39 = vmax.f32 %v770_v35, 0.0  ;;  %v740_v40 = vadd.f32 %v1631_v6, %v670_v36 }
  0xfd   : > { %v803_v41 = vmax.f32 %v739_v38, 0.0 }
  0xfe   : > { %v877_v42 = vpack.c.bf16 %v834_v39, %v833_v37  ;;  %v804_v43 = vmax.f32 %v740_v40, 0.0  ;;  %v536_v44 = vpop.f32.mrf.mxu2 }
  0xff   : > { %v701_v45 = vmul.f32 %v1625_v2, %v536_v44  ;;  %v625_v46 = vpop.f32.mrf.mxu3 }
 0x100   : > { %909 = vst [vmem:[%s1642_s5 + $0xa0] sm:$0xff] %v877_v42  ;;  %v862_v47 = vpack.c.bf16 %v804_v43, %v803_v41  ;;  %v702_v48 = vmul.f32 %v1627_v3, %v625_v46  ;;  %v499_v49 = vpop.f32.mrf.mxu0 }
 0x101   : > { %v771_v50 = vadd.f32 %v1629_v4, %v701_v45  ;;  %v671_v51 = vmul.f32 %v1625_v2, %v499_v49  ;;  %v588_v52 = vpop.f32.mrf.mxu1 }
 0x102   : > { %894 = vst [vmem:[%s1642_s5 + $0x28] sm:$0xff] %v862_v47  ;;  %v772_v53 = vadd.f32 %v1631_v6, %v702_v48  ;;  %v672_v54 = vmul.f32 %v1627_v3, %v588_v52 }
 0x103   : > { %v835_v55 = vmax.f32 %v771_v50, 0.0  ;;  %v741_v56 = vadd.f32 %v1629_v4, %v671_v51 }
 0x104   : > { %v836_v57 = vmax.f32 %v772_v53, 0.0  ;;  %v742_v58 = vadd.f32 %v1631_v6, %v672_v54 }
 0x105   : > { %v805_v59 = vmax.f32 %v741_v56, 0.0 }
 0x106   : > { %v878_v60 = vpack.c.bf16 %v836_v57, %v835_v55  ;;  %v806_v61 = vmax.f32 %v742_v58, 0.0  ;;  %v539_v62 = vpop.f32.mrf.mxu2 }
 0x107   : > { %v703_v63 = vmul.f32 %v1625_v2, %v539_v62  ;;  %v628_v0 = vpop.f32.mrf.mxu3 }
 0x108   : > { %910 = vst [vmem:[%s1642_s5 + $0xa8] sm:$0xff] %v878_v60  ;;  %v863_v1 = vpack.c.bf16 %v806_v61, %v805_v59  ;;  %v704_v5 = vmul.f32 %v1627_v3, %v628_v0  ;;  %v501_v7 = vpop.f32.mrf.mxu0 }
 0x109   : > { %v773_v8 = vadd.f32 %v1629_v4, %v703_v63  ;;  %v673_v9 = vmul.f32 %v1625_v2, %v501_v7  ;;  %v590_v10 = vpop.f32.mrf.mxu1 }
 0x10a   : > { %895 = vst [vmem:[%s1642_s5 + $0x30] sm:$0xff] %v863_v1  ;;  %v774_v11 = vadd.f32 %v1631_v6, %v704_v5  ;;  %v674_v12 = vmul.f32 %v1627_v3, %v590_v10 }
 0x10b   : > { %v837_v13 = vmax.f32 %v773_v8, 0.0  ;;  %v743_v14 = vadd.f32 %v1629_v4, %v673_v9 }
 0x10c   : > { %v838_v15 = vmax.f32 %v774_v11, 0.0  ;;  %v744_v16 = vadd.f32 %v1631_v6, %v674_v12 }
 0x10d   : > { %v807_v17 = vmax.f32 %v743_v14, 0.0 }
 0x10e   : > { %v879_v18 = vpack.c.bf16 %v838_v15, %v837_v13  ;;  %v808_v19 = vmax.f32 %v744_v16, 0.0  ;;  %v541_v20 = vpop.f32.mrf.mxu2 }
 0x10f   : > { %v705_v21 = vmul.f32 %v1625_v2, %v541_v20  ;;  %v630_v22 = vpop.f32.mrf.mxu3 }
 0x110   : > { %911 = vst [vmem:[%s1642_s5 + $0xb0] sm:$0xff] %v879_v18  ;;  %v864_v23 = vpack.c.bf16 %v808_v19, %v807_v17  ;;  %v706_v24 = vmul.f32 %v1627_v3, %v630_v22  ;;  %v504_v25 = vpop.f32.mrf.mxu0 }
 0x111   : > { %v775_v26 = vadd.f32 %v1629_v4, %v705_v21  ;;  %v675_v27 = vmul.f32 %v1625_v2, %v504_v25  ;;  %v593_v28 = vpop.f32.mrf.mxu1 }
 0x112   : > { %896 = vst [vmem:[%s1642_s5 + $0x38] sm:$0xff] %v864_v23  ;;  %v776_v29 = vadd.f32 %v1631_v6, %v706_v24  ;;  %v676_v30 = vmul.f32 %v1627_v3, %v593_v28 }
 0x113   : > { %v839_v31 = vmax.f32 %v775_v26, 0.0  ;;  %v745_v32 = vadd.f32 %v1629_v4, %v675_v27 }
 0x114   : > { %v840_v33 = vmax.f32 %v776_v29, 0.0  ;;  %v746_v34 = vadd.f32 %v1631_v6, %v676_v30 }
 0x115   : > { %v809_v35 = vmax.f32 %v745_v32, 0.0 }
 0x116   : > { %v880_v36 = vpack.c.bf16 %v840_v33, %v839_v31  ;;  %v810_v37 = vmax.f32 %v746_v34, 0.0  ;;  %v544_v38 = vpop.f32.mrf.mxu2 }
 0x117   : > { %v707_v39 = vmul.f32 %v1625_v2, %v544_v38  ;;  %v633_v40 = vpop.f32.mrf.mxu3 }
 0x118   : > { %912 = vst [vmem:[%s1642_s5 + $0xb8] sm:$0xff] %v880_v36  ;;  %v865_v41 = vpack.c.bf16 %v810_v37, %v809_v35  ;;  %v708_v42 = vmul.f32 %v1627_v3, %v633_v40  ;;  %v506_v43 = vpop.f32.mrf.mxu0 }
 0x119   : > { %v777_v44 = vadd.f32 %v1629_v4, %v707_v39  ;;  %v677_v45 = vmul.f32 %v1625_v2, %v506_v43  ;;  %v595_v46 = vpop.f32.mrf.mxu1 }
 0x11a   : > { %897 = vst [vmem:[%s1642_s5 + $0x40] sm:$0xff] %v865_v41  ;;  %v778_v47 = vadd.f32 %v1631_v6, %v708_v42  ;;  %v678_v48 = vmul.f32 %v1627_v3, %v595_v46 }
 0x11b   : > { %v841_v49 = vmax.f32 %v777_v44, 0.0  ;;  %v747_v50 = vadd.f32 %v1629_v4, %v677_v45 }
 0x11c   : > { %v842_v51 = vmax.f32 %v778_v47, 0.0  ;;  %v748_v52 = vadd.f32 %v1631_v6, %v678_v48 }
 0x11d   : > { %v811_v53 = vmax.f32 %v747_v50, 0.0 }
 0x11e   : > { %v881_v54 = vpack.c.bf16 %v842_v51, %v841_v49  ;;  %v812_v55 = vmax.f32 %v748_v52, 0.0  ;;  %v546_v56 = vpop.f32.mrf.mxu2 }
 0x11f   : > { %v709_v57 = vmul.f32 %v1625_v2, %v546_v56  ;;  %v635_v58 = vpop.f32.mrf.mxu3 }
 0x120   : > { %913 = vst [vmem:[%s1642_s5 + $0xc0] sm:$0xff] %v881_v54  ;;  %v866_v59 = vpack.c.bf16 %v812_v55, %v811_v53  ;;  %v710_v60 = vmul.f32 %v1627_v3, %v635_v58  ;;  %v509_v61 = vpop.f32.mrf.mxu0 }
 0x121   : > { %v779_v62 = vadd.f32 %v1629_v4, %v709_v57  ;;  %v679_v63 = vmul.f32 %v1625_v2, %v509_v61  ;;  %v598_v0 = vpop.f32.mrf.mxu1 }
 0x122   : > { %898 = vst [vmem:[%s1642_s5 + $0x48] sm:$0xff] %v866_v59  ;;  %v780_v1 = vadd.f32 %v1631_v6, %v710_v60  ;;  %v680_v5 = vmul.f32 %v1627_v3, %v598_v0 }
 0x123   : > { %v843_v7 = vmax.f32 %v779_v62, 0.0  ;;  %v749_v8 = vadd.f32 %v1629_v4, %v679_v63 }
 0x124   : > { %v844_v9 = vmax.f32 %v780_v1, 0.0  ;;  %v750_v10 = vadd.f32 %v1631_v6, %v680_v5 }
 0x125   : > { %v813_v11 = vmax.f32 %v749_v8, 0.0 }
 0x126   : > { %v882_v12 = vpack.c.bf16 %v844_v9, %v843_v7  ;;  %v814_v13 = vmax.f32 %v750_v10, 0.0  ;;  %v549_v14 = vpop.f32.mrf.mxu2 }
 0x127   : > { %v711_v15 = vmul.f32 %v1625_v2, %v549_v14  ;;  %v638_v16 = vpop.f32.mrf.mxu3 }
 0x128   : > { %914 = vst [vmem:[%s1642_s5 + $0xc8] sm:$0xff] %v882_v12  ;;  %v867_v17 = vpack.c.bf16 %v814_v13, %v813_v11  ;;  %v712_v18 = vmul.f32 %v1627_v3, %v638_v16  ;;  %v511_v19 = vpop.f32.mrf.mxu0 }
 0x129   : > { %v781_v20 = vadd.f32 %v1629_v4, %v711_v15  ;;  %v681_v21 = vmul.f32 %v1625_v2, %v511_v19  ;;  %v600_v22 = vpop.f32.mrf.mxu1 }
 0x12a   : > { %899 = vst [vmem:[%s1642_s5 + $0x50] sm:$0xff] %v867_v17  ;;  %v782_v23 = vadd.f32 %v1631_v6, %v712_v18  ;;  %v682_v24 = vmul.f32 %v1627_v3, %v600_v22 }
 0x12b   : > { %v845_v25 = vmax.f32 %v781_v20, 0.0  ;;  %v751_v26 = vadd.f32 %v1629_v4, %v681_v21 }
 0x12c   : > { %v846_v27 = vmax.f32 %v782_v23, 0.0  ;;  %v752_v28 = vadd.f32 %v1631_v6, %v682_v24 }
 0x12d   : > { %v815_v29 = vmax.f32 %v751_v26, 0.0 }
 0x12e   : > { %v883_v30 = vpack.c.bf16 %v846_v27, %v845_v25  ;;  %v816_v31 = vmax.f32 %v752_v28, 0.0  ;;  %v551_v32 = vpop.f32.mrf.mxu2 }
 0x12f   : > { %v713_v33 = vmul.f32 %v1625_v2, %v551_v32  ;;  %v640_v34 = vpop.f32.mrf.mxu3 }
 0x130   : > { %915 = vst [vmem:[%s1642_s5 + $0xd0] sm:$0xff] %v883_v30  ;;  %v868_v35 = vpack.c.bf16 %v816_v31, %v815_v29  ;;  %v714_v36 = vmul.f32 %v1627_v3, %v640_v34  ;;  %v514_v37 = vpop.f32.mrf.mxu0 }
 0x131   : > { %v783_v38 = vadd.f32 %v1629_v4, %v713_v33  ;;  %v683_v39 = vmul.f32 %v1625_v2, %v514_v37  ;;  %v603_v40 = vpop.f32.mrf.mxu1 }
 0x132   : > { %900 = vst [vmem:[%s1642_s5 + $0x58] sm:$0xff] %v868_v35  ;;  %v784_v41 = vadd.f32 %v1631_v6, %v714_v36  ;;  %v684_v42 = vmul.f32 %v1627_v3, %v603_v40 }
 0x133   : > { %v847_v43 = vmax.f32 %v783_v38, 0.0  ;;  %v753_v44 = vadd.f32 %v1629_v4, %v683_v39 }
 0x134   : > { %v848_v45 = vmax.f32 %v784_v41, 0.0  ;;  %v754_v46 = vadd.f32 %v1631_v6, %v684_v42 }
 0x135   : > { %v817_v47 = vmax.f32 %v753_v44, 0.0 }
 0x136   : > { %v884_v48 = vpack.c.bf16 %v848_v45, %v847_v43  ;;  %v818_v49 = vmax.f32 %v754_v46, 0.0  ;;  %v554_v50 = vpop.f32.mrf.mxu2 }
 0x137   : > { %v715_v51 = vmul.f32 %v1625_v2, %v554_v50  ;;  %v643_v52 = vpop.f32.mrf.mxu3 }
 0x138   : > { %916 = vst [vmem:[%s1642_s5 + $0xd8] sm:$0xff] %v884_v48  ;;  %v869_v53 = vpack.c.bf16 %v818_v49, %v817_v47  ;;  %v716_v54 = vmul.f32 %v1627_v3, %v643_v52  ;;  %v516_v55 = vpop.f32.mrf.mxu0 }
 0x139   : > { %v785_v56 = vadd.f32 %v1629_v4, %v715_v51  ;;  %v685_v57 = vmul.f32 %v1625_v2, %v516_v55  ;;  %v605_v58 = vpop.f32.mrf.mxu1 }
 0x13a   : > { %901 = vst [vmem:[%s1642_s5 + $0x60] sm:$0xff] %v869_v53  ;;  %v786_v59 = vadd.f32 %v1631_v6, %v716_v54  ;;  %v686_v60 = vmul.f32 %v1627_v3, %v605_v58 }
 0x13b   : > { %v849_v61 = vmax.f32 %v785_v56, 0.0  ;;  %v755_v62 = vadd.f32 %v1629_v4, %v685_v57 }
 0x13c   : > { %v850_v63 = vmax.f32 %v786_v59, 0.0  ;;  %v756_v0 = vadd.f32 %v1631_v6, %v686_v60 }
 0x13d   : > { %v819_v1 = vmax.f32 %v755_v62, 0.0 }
 0x13e   : > { %v885_v5 = vpack.c.bf16 %v850_v63, %v849_v61  ;;  %v820_v7 = vmax.f32 %v756_v0, 0.0  ;;  %v556_v8 = vpop.f32.mrf.mxu2 }
 0x13f   : > { %v717_v9 = vmul.f32 %v1625_v2, %v556_v8  ;;  %v645_v10 = vpop.f32.mrf.mxu3 }
 0x140   : > { %917 = vst [vmem:[%s1642_s5 + $0xe0] sm:$0xff] %v885_v5  ;;  %v870_v11 = vpack.c.bf16 %v820_v7, %v819_v1  ;;  %v718_v12 = vmul.f32 %v1627_v3, %v645_v10  ;;  %v519_v13 = vpop.f32.mrf.mxu0 }
 0x141   : > { %v787_v14 = vadd.f32 %v1629_v4, %v717_v9  ;;  %v687_v15 = vmul.f32 %v1625_v2, %v519_v13  ;;  %v608_v16 = vpop.f32.mrf.mxu1 }
 0x142   : > { %902 = vst [vmem:[%s1642_s5 + $0x68] sm:$0xff] %v870_v11  ;;  %v788_v17 = vadd.f32 %v1631_v6, %v718_v12  ;;  %v688_v18 = vmul.f32 %v1627_v3, %v608_v16 }
 0x143   : > { %v851_v19 = vmax.f32 %v787_v14, 0.0  ;;  %v757_v20 = vadd.f32 %v1629_v4, %v687_v15 }
 0x144   : > { %v852_v21 = vmax.f32 %v788_v17, 0.0  ;;  %v758_v22 = vadd.f32 %v1631_v6, %v688_v18 }
 0x145   : > { %v821_v23 = vmax.f32 %v757_v20, 0.0 }
 0x146   : > { %v886_v24 = vpack.c.bf16 %v852_v21, %v851_v19  ;;  %v822_v25 = vmax.f32 %v758_v22, 0.0  ;;  %v559_v26 = vpop.f32.mrf.mxu2 }
 0x147   : > { %v719_v27 = vmul.f32 %v1625_v2, %v559_v26  ;;  %v648_v28 = vpop.f32.mrf.mxu3 }
 0x148   : > { %918 = vst [vmem:[%s1642_s5 + $0xe8] sm:$0xff] %v886_v24  ;;  %v871_v29 = vpack.c.bf16 %v822_v25, %v821_v23  ;;  %v720_v30 = vmul.f32 %v1627_v3, %v648_v28  ;;  %v521_v31 = vpop.f32.mrf.mxu0 }
 0x149   : > { %v789_v32 = vadd.f32 %v1629_v4, %v719_v27  ;;  %v689_v33 = vmul.f32 %v1625_v2, %v521_v31  ;;  %v610_v34 = vpop.f32.mrf.mxu1 }
 0x14a   : > { %903 = vst [vmem:[%s1642_s5 + $0x70] sm:$0xff] %v871_v29  ;;  %v790_v35 = vadd.f32 %v1631_v6, %v720_v30  ;;  %v690_v36 = vmul.f32 %v1627_v3, %v610_v34 }
 0x14b   : > { %v853_v37 = vmax.f32 %v789_v32, 0.0  ;;  %v759_v38 = vadd.f32 %v1629_v4, %v689_v33 }
 0x14c   : > { %v854_v39 = vmax.f32 %v790_v35, 0.0  ;;  %v760_v40 = vadd.f32 %v1631_v6, %v690_v36 }
 0x14d   : > { %v823_v41 = vmax.f32 %v759_v38, 0.0 }
 0x14e   : > { %v887_v42 = vpack.c.bf16 %v854_v39, %v853_v37  ;;  %v824_v43 = vmax.f32 %v760_v40, 0.0  ;;  %v561_v44 = vpop.f32.mrf.mxu2 }
 0x14f   : > { %v721_v45 = vmul.f32 %v1625_v2, %v561_v44  ;;  %v650_v46 = vpop.f32.mrf.mxu3 }
 0x150   : > { %919 = vst [vmem:[%s1642_s5 + $0xf0] sm:$0xff] %v887_v42  ;;  %v872_v47 = vpack.c.bf16 %v824_v43, %v823_v41  ;;  %v722_v48 = vmul.f32 %v1627_v3, %v650_v46 }
 0x151   : > { %v791_v49 = vadd.f32 %v1629_v4, %v721_v45 }
 0x152   : > { %904 = vst [vmem:[%s1642_s5 + $0x78] sm:$0xff] %v872_v47  ;;  %v792_v50 = vadd.f32 %v1631_v6, %v722_v48 }
 0x153   : > { %v855_v2 = vmax.f32 %v791_v49, 0.0 }
 0x154   : > { %v856_v51 = vmax.f32 %v792_v50, 0.0 }
 0x156   : > { %v888_v52 = vpack.c.bf16 %v856_v51, %v855_v2 }
 0x158   : > { %920 = vst [vmem:[%s1642_s5 + $0xf8] sm:$0xff] %v888_v52 }
 0x159   : > { %1418 = shalt.err (!%p1415_p10)
}
 0x15a   : > { %s1469_s28 = smov 128   ;;  %s1470_s26 = smov 8  }
 0x15b   : > { %1238 = dma.vmem_to_hbm [thread:$0]  (%p1562_p3), %s936_s19, 4096, %s938_s23, %s922_s24, %s1469_s28, %s1469_s28, %s1470_s26  }
 0x15c PF: > { %s952_s30 = sand.u32 1, %s1449_s15   ;;  %p1840_p12 = scmp.ge.s32.totalorder %s1461_s18, 2 }
 0x15d   : > { %s953_s5 = scalar_lea.sflag [#allocation4], %s952_s30 }
 0x15e   : > { %p1252_p13 = pnand %p1840_p12, %p1531_p6 }
 0x160   : > { %p1253_p0 = pneg %p1252_p13 }
 0x162   : > { %1444 = dma.done.wait (%p1253_p0), %s953_s5, 4096  }
 0x163   : > { %1446 = vsyncadd (%p1253_p0), %s953_s5, 4294963200  ;;  %p18_p5 = scmp.ge.s32.totalorder %s1552_s10, 4   ;;  %s1841_s15 = smov %s1453_s16 }
 0x164   : > { %s1842_s16 = smov %s1457_s17  ;;  %s1843_s17 = smov %s1568_s14 }
 0x165   : > { %s1844_s18 = smov %s1552_s10  ;;  %20 = sbr.rel (!%p18_p5) target bundleno = 6 (0x6), region = 89 }
 0x16a   :  { %959 = vsyncpa [#allocation3], 1 }
 0x16b   :  { %961 = vsyncpa [#allocation3 + $0x1], 1 }
 0x16c   :  { %962 = vsyncpa [#allocation6], 1 }
 0x16d   :  { %963 = vsyncpa [#allocation4], 1 }
 0x16e   :  { %965 = vsyncpa [#allocation4 + $0x1], 1 }

</bundles_post_ra>
